<compile_context>
chip_gen: v7x
topology: tpu7x:2x2x1
jax: 0.10.0
libtpu: 0.0.40
codegen_flags: <defaults>
</compile_context>

<pallas_src>
import functools

import jax
import jax.numpy as jnp
from jax.experimental import pallas as pl
from jax.experimental.pallas import tpu as pltpu

EPS = 1e-5

# Tap order: dy-major, dx-minor — matches the (kh, kw) order of the reshaped
# conv weights and of the precomputed boundary masks.
_TAPS = tuple((dy, dx) for dy in (-1, 0, 1) for dx in (-1, 0, 1))


def pool_block_kernel(x_ref, res_ref, mask_ref, w1_ref, s1_ref, b1_ref,
                      w2_ref, s2_ref, b2_ref, out_ref, patch_ref, *, H, W):
    # x_ref    : (1, Cin,  H*W) f32   flattened NCHW input (no pre-padding)
    # res_ref  : (1, Cout, H*W) f32   residual
    # mask_ref : (9, H*W)       f32   0/1 validity of each tap (= conv padding)
    # w1_ref   : (Cout, 9*Cin)  bf16  conv1 taps ((kh,kw) major, cin minor)
    # w2_ref   : (Cout, 9*Cout) bf16  conv2 taps
    # s*/b*    : (Cout, 1)      f32   folded eval-mode BatchNorm scale / bias
    # out_ref  : (1, Cout, H*W) f32
    # patch_ref: VMEM scratch (9*max(Cin,Cout), H*W) f32 — im2col staging.
    #            Never zero-initialised: every row that is read is written
    #            first on every use (no per-step scratch zeroing).
    HW = H * W
    Cin = x_ref.shape[1]
    Cout = out_ref.shape[1]

    def im2col(t, C):
        # Build (9*C, HW): tap k occupies rows [k*C, (k+1)*C).
        for k, (dy, dx) in enumerate(_TAPS):
            off = dy * W + dx
            if off == 0:
                v = t
            else:
                # rolled[:, p] = t[:, (p + off) % HW]; the wrapped entries are
                # exactly the conv zero-padding positions -> zeroed by mask.
                v = pltpu.roll(t, shift=(-off) % HW, axis=1)
                v = v * mask_ref[k:k + 1, :]
            patch_ref[k * C:(k + 1) * C, :] = v
        return patch_ref[0:9 * C, :].astype(jnp.bfloat16)

    x = x_ref[0]                                              # (Cin, HW)

    # conv1 + bn1 + ReLU — single MXU matmul, K = 9*Cin.
    h = jnp.dot(w1_ref[...], im2col(x, Cin),
                preferred_element_type=jnp.float32)           # (Cout, HW)
    h = jnp.maximum(h * s1_ref[...] + b1_ref[...], 0.0)

    # conv2 + bn2 + residual add + ReLU — single MXU matmul, K = 9*Cout.
    o = jnp.dot(w2_ref[...], im2col(h, Cout),
                preferred_element_type=jnp.float32)           # (Cout, HW)
    o = o * s2_ref[...] + b2_ref[...] + res_ref[0]
    out_ref[0] = jnp.maximum(o, 0.0).astype(out_ref.dtype)


def _fold_bn(gamma, beta, mean, var):
    scale = gamma / jnp.sqrt(var + EPS)
    bias = beta - mean * scale
    return scale, bias


def _conv_weight_matrix(w):
    # (Cout, Cin, 3, 3) -> (Cout, 9*Cin), (kh,kw) major / cin minor, bf16 MXU.
    cout, cin = w.shape[0], w.shape[1]
    return jnp.transpose(w, (0, 2, 3, 1)).reshape(cout, 9 * cin).astype(jnp.bfloat16)


def _tap_masks(H, W):
    # (9, H*W) f32 0/1 masks: 1 where the shifted source pixel is in-bounds.
    ys = jnp.arange(H).reshape(H, 1)
    xs = jnp.arange(W).reshape(1, W)
    ms = []
    for dy, dx in _TAPS:
        m = (ys + dy >= 0) & (ys + dy < H) & (xs + dx >= 0) & (xs + dx < W)
        ms.append(m.reshape(H * W))
    return jnp.stack(ms).astype(jnp.float32)


def pool_block(x_nchw, params, downsample=False):
    """PoolBlock forward.  x_nchw: (N, Cin, H, W) float32 -> (N, Cout, H, W)."""
    Cout = params["w1"].shape[0]
    x = x_nchw.astype(jnp.float32)

    if downsample:
        # nn.ZeroPad2d((1, 0, 1, 0)) + nn.MaxPool2d(3, stride=2) — JAX glue.
        xp = jnp.pad(x, ((0, 0), (0, 0), (1, 0), (1, 0)))
        conv_in = jax.lax.reduce_window(xp, -jnp.inf, jax.lax.max,
                                        (1, 1, 3, 3), (1, 1, 2, 2), "VALID")
        # shortcut: 1x1 conv (no bias) + BatchNorm — JAX glue (pure matmul).
        w_sc = params["w_sc"][:, :, 0, 0]                      # (Cout, Cin)
        res = jnp.einsum("nchw,oc->nohw", x, w_sc)
        s_sc, b_sc = _fold_bn(params["bn_sc_gamma"], params["bn_sc_beta"],
                              params["bn_sc_mean"], params["bn_sc_var"])
        res = res * s_sc[None, :, None, None] + b_sc[None, :, None, None]
    else:
        conv_in = x
        res = x

    N, Cin, H, W = conv_in.shape
    if res.shape != (N, Cout, H, W):
        # TODO(synk): with downsample=True the original module's shortcut is
        # stride-1, so residual/pooled spatial dims mismatch and PyTorch would
        # also fail on `out += residual`; we raise the same way.
        raise ValueError(f"residual shape {res.shape} incompatible with "
                         f"conv output shape {(N, Cout, H, W)}")

    HW = H * W
    x_flat = conv_in.reshape(N, Cin, HW)      # NCHW -> (N, C, H*W): free reshape
    res_flat = res.reshape(N, Cout, HW)
    masks = _tap_masks(H, W)

    w1 = _conv_weight_matrix(params["w1"])                     # (Cout, 9*Cin)
    w2 = _conv_weight_matrix(params["w2"])                     # (Cout, 9*Cout)
    s1, b1 = _fold_bn(params["bn1_gamma"], params["bn1_beta"],
                      params["bn1_mean"], params["bn1_var"])
    s2, b2 = _fold_bn(params["bn2_gamma"], params["bn2_beta"],
                      params["bn2_mean"], params["bn2_var"])
    s1, b1 = s1.reshape(Cout, 1), b1.reshape(Cout, 1)
    s2, b2 = s2.reshape(Cout, 1), b2.reshape(Cout, 1)

    # TODO(synk): for ResNet-scale H*W add a spatial (row-band) grid axis with
    # a 1-row halo and set vmem_limit_bytes; whole-image blocks are fine at
    # the small shapes used here and fit well inside the 32 MiB scoped VMEM.
    kernel = functools.partial(pool_block_kernel, H=H, W=W)
    out_flat = pl.pallas_call(
        kernel,
        out_shape=jax.ShapeDtypeStruct((N, Cout, HW), jnp.float32),
        grid=(N,),
        in_specs=[
            pl.BlockSpec((1, Cin, HW), lambda n: (n, 0, 0)),
            pl.BlockSpec((1, Cout, HW), lambda n: (n, 0, 0)),
            pl.BlockSpec((9, HW), lambda n: (0, 0)),
            pl.BlockSpec((Cout, 9 * Cin), lambda n: (0, 0)),
            pl.BlockSpec((Cout, 1), lambda n: (0, 0)),
            pl.BlockSpec((Cout, 1), lambda n: (0, 0)),
            pl.BlockSpec((Cout, 9 * Cout), lambda n: (0, 0)),
            pl.BlockSpec((Cout, 1), lambda n: (0, 0)),
            pl.BlockSpec((Cout, 1), lambda n: (0, 0)),
        ],
        out_specs=pl.BlockSpec((1, Cout, HW), lambda n: (n, 0, 0)),
        scratch_shapes=[pltpu.VMEM((9 * max(Cin, Cout), HW), jnp.float32)],
        compiler_params=pltpu.CompilerParams(dimension_semantics=("parallel",)),
    )(x_flat, res_flat, masks, w1, s1, b1, w2, s2, b2)

    return out_flat.reshape(N, Cout, H, W)     # already NCHW: free reshape


def init_params(key, inplanes, outplanes):
    ks = jax.random.split(key, 16)
    f32 = jnp.float32

    def bn_params(k0, k1, k2, k3, c):
        return (1.0 + 0.1 * jax.random.normal(k0, (c,), f32),    # gamma
                0.1 * jax.random.normal(k1, (c,), f32),           # beta
                0.1 * jax.random.normal(k2, (c,), f32),           # running_mean
                0.5 + jnp.abs(jax.random.normal(k3, (c,), f32)))  # running_var

    p = {}
    p["w1"] = 0.1 * jax.random.normal(ks[0], (outplanes, inplanes, 3, 3), f32)
    p["bn1_gamma"], p["bn1_beta"], p["bn1_mean"], p["bn1_var"] = bn_params(
        ks[1], ks[2], ks[3], ks[4], outplanes)
    p["w2"] = 0.1 * jax.random.normal(ks[5], (outplanes, outplanes, 3, 3), f32)
    p["bn2_gamma"], p["bn2_beta"], p["bn2_mean"], p["bn2_var"] = bn_params(
        ks[6], ks[7], ks[8], ks[9], outplanes)
    p["w_sc"] = 0.1 * jax.random.normal(ks[10], (outplanes, inplanes, 1, 1), f32)
    p["bn_sc_gamma"], p["bn_sc_beta"], p["bn_sc_mean"], p["bn_sc_var"] = bn_params(
        ks[11], ks[12], ks[13], ks[14], outplanes)
    return p


def pool_block_ref(x, params, downsample=False):
    """Pure-JAX reference (NCHW, mirrors the PyTorch forward, f32 throughout)."""
    def conv3x3(z, w):
        return jax.lax.conv_general_dilated(
            z, w, (1, 1), ((1, 1), (1, 1)),
            dimension_numbers=("NCHW", "OIHW", "NCHW"))

    def bn(z, g, b, m, v):
        g, b, m, v = (a[None, :, None, None] for a in (g, b, m, v))
        return (z - m) / jnp.sqrt(v + EPS) * g + b

    out = x
    if downsample:
        out = jnp.pad(out, ((0, 0), (0, 0), (1, 0), (1, 0)))
        out = jax.lax.reduce_window(out, -jnp.inf, jax.lax.max,
                                    (1, 1, 3, 3), (1, 1, 2, 2), "VALID")
    out = conv3x3(out, params["w1"])
    out = bn(out, params["bn1_gamma"], params["bn1_beta"],
             params["bn1_mean"], params["bn1_var"])
    out = jnp.maximum(out, 0.0)
    out = conv3x3(out, params["w2"])
    out = bn(out, params["bn2_gamma"], params["bn2_beta"],
             params["bn2_mean"], params["bn2_var"])
    if downsample:
        residual = jax.lax.conv_general_dilated(
            x, params["w_sc"], (1, 1), "VALID",
            dimension_numbers=("NCHW", "OIHW", "NCHW"))
        residual = bn(residual, params["bn_sc_gamma"], params["bn_sc_beta"],
                      params["bn_sc_mean"], params["bn_sc_var"])
    else:
        residual = x
    return jnp.maximum(out + residual, 0.0)


if __name__ == "__main__":
    key = jax.random.PRNGKey(0)
    k_x, k_p = jax.random.split(key)

    N, C, H, W = 2, 4, 16, 16          # inplanes == outplanes (downsample=False)
    x = jax.random.normal(k_x, (N, C, H, W), jnp.float32)
    params = init_params(k_p, C, C)

    y = pool_block(x, params, downsample=False)
    jax.block_until_ready(y)

    y_ref = pool_block_ref(x, params, downsample=False)
    assert y.shape == y_ref.shape == (N, C, H, W)
    # bf16 MXU operands (weights + im2col patches) cost ~1e-2 worst-case abs
    # deviation from the f32 reference at these magnitudes; any structural bug
    # (wrong tap/shift/mask) shows up as O(0.1-1) error and still fails here.
    assert jnp.allclose(y, y_ref, atol=3e-2, rtol=3e-2), (
        float(jnp.max(jnp.abs(y - y_ref))))

    print("KERNEL_OK")
</pallas_src>

<mosaic_0001>
module attributes {stable_mosaic.version = 11 : i64} {
  func.func @pool_block_kernel(%arg0: i32, %arg1: memref<1x4x256xf32, #tpu.memory_space<vmem>>, %arg2: memref<1x4x256xf32, #tpu.memory_space<vmem>>, %arg3: memref<9x256xf32, #tpu.memory_space<vmem>>, %arg4: memref<4x36xbf16, #tpu.memory_space<vmem>>, %arg5: memref<4x1xf32, #tpu.memory_space<vmem>>, %arg6: memref<4x1xf32, #tpu.memory_space<vmem>>, %arg7: memref<4x36xbf16, #tpu.memory_space<vmem>>, %arg8: memref<4x1xf32, #tpu.memory_space<vmem>>, %arg9: memref<4x1xf32, #tpu.memory_space<vmem>>, %arg10: memref<1x4x256xf32, #tpu.memory_space<vmem>>, %arg11: memref<36x256xf32, #tpu.memory_space<vmem>>) attributes {dimension_semantics = [#tpu.dimension_semantics<parallel>], iteration_bounds = array<i64: 2>, scalar_prefetch = 0 : i64, scratch_operands = 1 : i64, tpu.core_type = #tpu.core_type<tc>, window_params = [{transform_indices = @transform_0, window_bounds = array<i64: 1, 4, 256>}, {transform_indices = @transform_1, window_bounds = array<i64: 1, 4, 256>}, {pipeline_mode = #tpu.pipeline_mode<synchronous>, transform_indices = @transform_2, window_bounds = array<i64: 9, 256>}, {pipeline_mode = #tpu.pipeline_mode<synchronous>, transform_indices = @transform_3, window_bounds = array<i64: 4, 36>}, {pipeline_mode = #tpu.pipeline_mode<synchronous>, transform_indices = @transform_4, window_bounds = array<i64: 4, 1>}, {pipeline_mode = #tpu.pipeline_mode<synchronous>, transform_indices = @transform_5, window_bounds = array<i64: 4, 1>}, {pipeline_mode = #tpu.pipeline_mode<synchronous>, transform_indices = @transform_6, window_bounds = array<i64: 4, 36>}, {pipeline_mode = #tpu.pipeline_mode<synchronous>, transform_indices = @transform_7, window_bounds = array<i64: 4, 1>}, {pipeline_mode = #tpu.pipeline_mode<synchronous>, transform_indices = @transform_8, window_bounds = array<i64: 4, 1>}, {transform_indices = @transform_9, window_bounds = array<i64: 1, 4, 256>}]} {
    %c0 = arith.constant 0 : index
    %c0_0 = arith.constant 0 : index
    %c0_1 = arith.constant 0 : index
    %0 = vector.load %arg1[%c0, %c0_0, %c0_1] : memref<1x4x256xf32, #tpu.memory_space<vmem>>, vector<1x4x256xf32>
    %1 = vector.shape_cast %0 : vector<1x4x256xf32> to vector<4x256xf32>
    %c0_2 = arith.constant 0 : index
    %c0_3 = arith.constant 0 : index
    %2 = vector.load %arg4[%c0_2, %c0_3] : memref<4x36xbf16, #tpu.memory_space<vmem>>, vector<4x36xbf16>
    %c17_i32 = arith.constant 17 : i32
    %3 = tpu.dynamic_rotate %1 by %c17_i32 dim 1 : vector<4x256xf32>, i32 -> vector<4x256xf32>
    %c0_4 = arith.constant 0 : index
    %c0_5 = arith.constant 0 : index
    %4 = vector.load %arg3[%c0_4, %c0_5] : memref<9x256xf32, #tpu.memory_space<vmem>>, vector<1x256xf32>
    %5 = vector.broadcast %4 : vector<1x256xf32> to vector<4x256xf32>
    %6 = arith.mulf %3, %5 : vector<4x256xf32>
    %c0_6 = arith.constant 0 : index
    %c0_7 = arith.constant 0 : index
    %7 = vector.load %arg11[%c0_6, %c0_7] : memref<36x256xf32, #tpu.memory_space<vmem>>, vector<4x256xf32>
    tpu.vector_store %arg11[%c0_6, %c0_7], %6 {strides = array<i32>} : memref<36x256xf32, #tpu.memory_space<vmem>>, vector<4x256xf32>,
    %c16_i32 = arith.constant 16 : i32
    %8 = tpu.dynamic_rotate %1 by %c16_i32 dim 1 : vector<4x256xf32>, i32 -> vector<4x256xf32>
    %c1 = arith.constant 1 : index
    %c0_8 = arith.constant 0 : index
    %9 = vector.load %arg3[%c1, %c0_8] : memref<9x256xf32, #tpu.memory_space<vmem>>, vector<1x256xf32>
    %10 = vector.broadcast %9 : vector<1x256xf32> to vector<4x256xf32>
    %11 = arith.mulf %8, %10 : vector<4x256xf32>
    %c4 = arith.constant 4 : index
    %c0_9 = arith.constant 0 : index
    %12 = vector.load %arg11[%c4, %c0_9] : memref<36x256xf32, #tpu.memory_space<vmem>>, vector<4x256xf32>
    tpu.vector_store %arg11[%c4, %c0_9], %11 {strides = array<i32>} : memref<36x256xf32, #tpu.memory_space<vmem>>, vector<4x256xf32>,
    %c15_i32 = arith.constant 15 : i32
    %13 = tpu.dynamic_rotate %1 by %c15_i32 dim 1 : vector<4x256xf32>, i32 -> vector<4x256xf32>
    %c2 = arith.constant 2 : index
    %c0_10 = arith.constant 0 : index
    %14 = vector.load %arg3[%c2, %c0_10] : memref<9x256xf32, #tpu.memory_space<vmem>>, vector<1x256xf32>
    %15 = vector.broadcast %14 : vector<1x256xf32> to vector<4x256xf32>
    %16 = arith.mulf %13, %15 : vector<4x256xf32>
    %c8 = arith.constant 8 : index
    %c0_11 = arith.constant 0 : index
    %17 = vector.load %arg11[%c8, %c0_11] : memref<36x256xf32, #tpu.memory_space<vmem>>, vector<4x256xf32>
    tpu.vector_store %arg11[%c8, %c0_11], %16 {strides = array<i32>} : memref<36x256xf32, #tpu.memory_space<vmem>>, vector<4x256xf32>,
    %c1_i32 = arith.constant 1 : i32
    %18 = tpu.dynamic_rotate %1 by %c1_i32 dim 1 : vector<4x256xf32>, i32 -> vector<4x256xf32>
    %c3 = arith.constant 3 : index
    %c0_12 = arith.constant 0 : index
    %19 = vector.load %arg3[%c3, %c0_12] : memref<9x256xf32, #tpu.memory_space<vmem>>, vector<1x256xf32>
    %20 = vector.broadcast %19 : vector<1x256xf32> to vector<4x256xf32>
    %21 = arith.mulf %18, %20 : vector<4x256xf32>
    %c12 = arith.constant 12 : index
    %c0_13 = arith.constant 0 : index
    %22 = vector.load %arg11[%c12, %c0_13] : memref<36x256xf32, #tpu.memory_space<vmem>>, vector<4x256xf32>
    tpu.vector_store %arg11[%c12, %c0_13], %21 {strides = array<i32>} : memref<36x256xf32, #tpu.memory_space<vmem>>, vector<4x256xf32>,
    %c16 = arith.constant 16 : index
    %c0_14 = arith.constant 0 : index
    %23 = vector.load %arg11[%c16, %c0_14] : memref<36x256xf32, #tpu.memory_space<vmem>>, vector<4x256xf32>
    tpu.vector_store %arg11[%c16, %c0_14], %1 {strides = array<i32>} : memref<36x256xf32, #tpu.memory_space<vmem>>, vector<4x256xf32>,
    %c255_i32 = arith.constant 255 : i32
    %24 = tpu.dynamic_rotate %1 by %c255_i32 dim 1 : vector<4x256xf32>, i32 -> vector<4x256xf32>
    %c5 = arith.constant 5 : index
    %c0_15 = arith.constant 0 : index
    %25 = vector.load %arg3[%c5, %c0_15] : memref<9x256xf32, #tpu.memory_space<vmem>>, vector<1x256xf32>
    %26 = vector.broadcast %25 : vector<1x256xf32> to vector<4x256xf32>
    %27 = arith.mulf %24, %26 : vector<4x256xf32>
    %c20 = arith.constant 20 : index
    %c0_16 = arith.constant 0 : index
    %28 = vector.load %arg11[%c20, %c0_16] : memref<36x256xf32, #tpu.memory_space<vmem>>, vector<4x256xf32>
    tpu.vector_store %arg11[%c20, %c0_16], %27 {strides = array<i32>} : memref<36x256xf32, #tpu.memory_space<vmem>>, vector<4x256xf32>,
    %c241_i32 = arith.constant 241 : i32
    %29 = tpu.dynamic_rotate %1 by %c241_i32 dim 1 : vector<4x256xf32>, i32 -> vector<4x256xf32>
    %c6 = arith.constant 6 : index
    %c0_17 = arith.constant 0 : index
    %30 = vector.load %arg3[%c6, %c0_17] : memref<9x256xf32, #tpu.memory_space<vmem>>, vector<1x256xf32>
    %31 = vector.broadcast %30 : vector<1x256xf32> to vector<4x256xf32>
    %32 = arith.mulf %29, %31 : vector<4x256xf32>
    %c24 = arith.constant 24 : index
    %c0_18 = arith.constant 0 : index
    %33 = vector.load %arg11[%c24, %c0_18] : memref<36x256xf32, #tpu.memory_space<vmem>>, vector<4x256xf32>
    tpu.vector_store %arg11[%c24, %c0_18], %32 {strides = array<i32>} : memref<36x256xf32, #tpu.memory_space<vmem>>, vector<4x256xf32>,
    %c240_i32 = arith.constant 240 : i32
    %34 = tpu.dynamic_rotate %1 by %c240_i32 dim 1 : vector<4x256xf32>, i32 -> vector<4x256xf32>
    %c7 = arith.constant 7 : index
    %c0_19 = arith.constant 0 : index
    %35 = vector.load %arg3[%c7, %c0_19] : memref<9x256xf32, #tpu.memory_space<vmem>>, vector<1x256xf32>
    %36 = vector.broadcast %35 : vector<1x256xf32> to vector<4x256xf32>
    %37 = arith.mulf %34, %36 : vector<4x256xf32>
    %c28 = arith.constant 28 : index
    %c0_20 = arith.constant 0 : index
    %38 = vector.load %arg11[%c28, %c0_20] : memref<36x256xf32, #tpu.memory_space<vmem>>, vector<4x256xf32>
    tpu.vector_store %arg11[%c28, %c0_20], %37 {strides = array<i32>} : memref<36x256xf32, #tpu.memory_space<vmem>>, vector<4x256xf32>,
    %c239_i32 = arith.constant 239 : i32
    %39 = tpu.dynamic_rotate %1 by %c239_i32 dim 1 : vector<4x256xf32>, i32 -> vector<4x256xf32>
    %c8_21 = arith.constant 8 : index
    %c0_22 = arith.constant 0 : index
    %40 = vector.load %arg3[%c8_21, %c0_22] : memref<9x256xf32, #tpu.memory_space<vmem>>, vector<1x256xf32>
    %41 = vector.broadcast %40 : vector<1x256xf32> to vector<4x256xf32>
    %42 = arith.mulf %39, %41 : vector<4x256xf32>
    %c32 = arith.constant 32 : index
    %c0_23 = arith.constant 0 : index
    %43 = vector.load %arg11[%c32, %c0_23] : memref<36x256xf32, #tpu.memory_space<vmem>>, vector<4x256xf32>
    tpu.vector_store %arg11[%c32, %c0_23], %42 {strides = array<i32>} : memref<36x256xf32, #tpu.memory_space<vmem>>, vector<4x256xf32>,
    %c0_24 = arith.constant 0 : index
    %c0_25 = arith.constant 0 : index
    %44 = vector.load %arg11[%c0_24, %c0_25] : memref<36x256xf32, #tpu.memory_space<vmem>>, vector<36x256xf32>
    %45 = arith.truncf %44 : vector<36x256xf32> to vector<36x256xbf16>
    %cst = arith.constant dense<0.000000e+00> : vector<4x256xf32>
    %46 = tpu.matmul %2, %45, %cst {dimension_numbers = #tpu.dot_dimension_numbers<[1], [0], [0], [1], [0, 0, 1, 1], [], []>} : vector<4x36xbf16>, vector<36x256xbf16>, vector<4x256xf32> -> vector<4x256xf32>
    %c0_26 = arith.constant 0 : index
    %c0_27 = arith.constant 0 : index
    %47 = vector.load %arg5[%c0_26, %c0_27] : memref<4x1xf32, #tpu.memory_space<vmem>>, vector<4x1xf32>
    %48 = vector.broadcast %47 : vector<4x1xf32> to vector<4x256xf32>
    %49 = arith.mulf %46, %48 : vector<4x256xf32>
    %c0_28 = arith.constant 0 : index
    %c0_29 = arith.constant 0 : index
    %50 = vector.load %arg6[%c0_28, %c0_29] : memref<4x1xf32, #tpu.memory_space<vmem>>, vector<4x1xf32>
    %51 = vector.broadcast %50 : vector<4x1xf32> to vector<4x256xf32>
    %52 = arith.addf %49, %51 : vector<4x256xf32>
    %cst_30 = arith.constant 0.000000e+00 : f32
    %53 = vector.broadcast %cst_30 : f32 to vector<4x256xf32>
    %54 = arith.maximumf %52, %53 : vector<4x256xf32>
    %c0_31 = arith.constant 0 : index
    %c0_32 = arith.constant 0 : index
    %55 = vector.load %arg7[%c0_31, %c0_32] : memref<4x36xbf16, #tpu.memory_space<vmem>>, vector<4x36xbf16>
    %c17_i32_33 = arith.constant 17 : i32
    %56 = tpu.dynamic_rotate %54 by %c17_i32_33 dim 1 : vector<4x256xf32>, i32 -> vector<4x256xf32>
    %c0_34 = arith.constant 0 : index
    %c0_35 = arith.constant 0 : index
    %57 = vector.load %arg3[%c0_34, %c0_35] : memref<9x256xf32, #tpu.memory_space<vmem>>, vector<1x256xf32>
    %58 = vector.broadcast %57 : vector<1x256xf32> to vector<4x256xf32>
    %59 = arith.mulf %56, %58 : vector<4x256xf32>
    %c0_36 = arith.constant 0 : index
    %c0_37 = arith.constant 0 : index
    %60 = vector.load %arg11[%c0_36, %c0_37] : memref<36x256xf32, #tpu.memory_space<vmem>>, vector<4x256xf32>
    tpu.vector_store %arg11[%c0_36, %c0_37], %59 {strides = array<i32>} : memref<36x256xf32, #tpu.memory_space<vmem>>, vector<4x256xf32>,
    %c16_i32_38 = arith.constant 16 : i32
    %61 = tpu.dynamic_rotate %54 by %c16_i32_38 dim 1 : vector<4x256xf32>, i32 -> vector<4x256xf32>
    %c1_39 = arith.constant 1 : index
    %c0_40 = arith.constant 0 : index
    %62 = vector.load %arg3[%c1_39, %c0_40] : memref<9x256xf32, #tpu.memory_space<vmem>>, vector<1x256xf32>
    %63 = vector.broadcast %62 : vector<1x256xf32> to vector<4x256xf32>
    %64 = arith.mulf %61, %63 : vector<4x256xf32>
    %c4_41 = arith.constant 4 : index
    %c0_42 = arith.constant 0 : index
    %65 = vector.load %arg11[%c4_41, %c0_42] : memref<36x256xf32, #tpu.memory_space<vmem>>, vector<4x256xf32>
    tpu.vector_store %arg11[%c4_41, %c0_42], %64 {strides = array<i32>} : memref<36x256xf32, #tpu.memory_space<vmem>>, vector<4x256xf32>,
    %c15_i32_43 = arith.constant 15 : i32
    %66 = tpu.dynamic_rotate %54 by %c15_i32_43 dim 1 : vector<4x256xf32>, i32 -> vector<4x256xf32>
    %c2_44 = arith.constant 2 : index
    %c0_45 = arith.constant 0 : index
    %67 = vector.load %arg3[%c2_44, %c0_45] : memref<9x256xf32, #tpu.memory_space<vmem>>, vector<1x256xf32>
    %68 = vector.broadcast %67 : vector<1x256xf32> to vector<4x256xf32>
    %69 = arith.mulf %66, %68 : vector<4x256xf32>
    %c8_46 = arith.constant 8 : index
    %c0_47 = arith.constant 0 : index
    %70 = vector.load %arg11[%c8_46, %c0_47] : memref<36x256xf32, #tpu.memory_space<vmem>>, vector<4x256xf32>
    tpu.vector_store %arg11[%c8_46, %c0_47], %69 {strides = array<i32>} : memref<36x256xf32, #tpu.memory_space<vmem>>, vector<4x256xf32>,
    %c1_i32_48 = arith.constant 1 : i32
    %71 = tpu.dynamic_rotate %54 by %c1_i32_48 dim 1 : vector<4x256xf32>, i32 -> vector<4x256xf32>
    %c3_49 = arith.constant 3 : index
    %c0_50 = arith.constant 0 : index
    %72 = vector.load %arg3[%c3_49, %c0_50] : memref<9x256xf32, #tpu.memory_space<vmem>>, vector<1x256xf32>
    %73 = vector.broadcast %72 : vector<1x256xf32> to vector<4x256xf32>
    %74 = arith.mulf %71, %73 : vector<4x256xf32>
    %c12_51 = arith.constant 12 : index
    %c0_52 = arith.constant 0 : index
    %75 = vector.load %arg11[%c12_51, %c0_52] : memref<36x256xf32, #tpu.memory_space<vmem>>, vector<4x256xf32>
    tpu.vector_store %arg11[%c12_51, %c0_52], %74 {strides = array<i32>} : memref<36x256xf32, #tpu.memory_space<vmem>>, vector<4x256xf32>,
    %c16_53 = arith.constant 16 : index
    %c0_54 = arith.constant 0 : index
    %76 = vector.load %arg11[%c16_53, %c0_54] : memref<36x256xf32, #tpu.memory_space<vmem>>, vector<4x256xf32>
    tpu.vector_store %arg11[%c16_53, %c0_54], %54 {strides = array<i32>} : memref<36x256xf32, #tpu.memory_space<vmem>>, vector<4x256xf32>,
    %c255_i32_55 = arith.constant 255 : i32
    %77 = tpu.dynamic_rotate %54 by %c255_i32_55 dim 1 : vector<4x256xf32>, i32 -> vector<4x256xf32>
    %c5_56 = arith.constant 5 : index
    %c0_57 = arith.constant 0 : index
    %78 = vector.load %arg3[%c5_56, %c0_57] : memref<9x256xf32, #tpu.memory_space<vmem>>, vector<1x256xf32>
    %79 = vector.broadcast %78 : vector<1x256xf32> to vector<4x256xf32>
    %80 = arith.mulf %77, %79 : vector<4x256xf32>
    %c20_58 = arith.constant 20 : index
    %c0_59 = arith.constant 0 : index
    %81 = vector.load %arg11[%c20_58, %c0_59] : memref<36x256xf32, #tpu.memory_space<vmem>>, vector<4x256xf32>
    tpu.vector_store %arg11[%c20_58, %c0_59], %80 {strides = array<i32>} : memref<36x256xf32, #tpu.memory_space<vmem>>, vector<4x256xf32>,
    %c241_i32_60 = arith.constant 241 : i32
    %82 = tpu.dynamic_rotate %54 by %c241_i32_60 dim 1 : vector<4x256xf32>, i32 -> vector<4x256xf32>
    %c6_61 = arith.constant 6 : index
    %c0_62 = arith.constant 0 : index
    %83 = vector.load %arg3[%c6_61, %c0_62] : memref<9x256xf32, #tpu.memory_space<vmem>>, vector<1x256xf32>
    %84 = vector.broadcast %83 : vector<1x256xf32> to vector<4x256xf32>
    %85 = arith.mulf %82, %84 : vector<4x256xf32>
    %c24_63 = arith.constant 24 : index
    %c0_64 = arith.constant 0 : index
    %86 = vector.load %arg11[%c24_63, %c0_64] : memref<36x256xf32, #tpu.memory_space<vmem>>, vector<4x256xf32>
    tpu.vector_store %arg11[%c24_63, %c0_64], %85 {strides = array<i32>} : memref<36x256xf32, #tpu.memory_space<vmem>>, vector<4x256xf32>,
    %c240_i32_65 = arith.constant 240 : i32
    %87 = tpu.dynamic_rotate %54 by %c240_i32_65 dim 1 : vector<4x256xf32>, i32 -> vector<4x256xf32>
    %c7_66 = arith.constant 7 : index
    %c0_67 = arith.constant 0 : index
    %88 = vector.load %arg3[%c7_66, %c0_67] : memref<9x256xf32, #tpu.memory_space<vmem>>, vector<1x256xf32>
    %89 = vector.broadcast %88 : vector<1x256xf32> to vector<4x256xf32>
    %90 = arith.mulf %87, %89 : vector<4x256xf32>
    %c28_68 = arith.constant 28 : index
    %c0_69 = arith.constant 0 : index
    %91 = vector.load %arg11[%c28_68, %c0_69] : memref<36x256xf32, #tpu.memory_space<vmem>>, vector<4x256xf32>
    tpu.vector_store %arg11[%c28_68, %c0_69], %90 {strides = array<i32>} : memref<36x256xf32, #tpu.memory_space<vmem>>, vector<4x256xf32>,
    %c239_i32_70 = arith.constant 239 : i32
    %92 = tpu.dynamic_rotate %54 by %c239_i32_70 dim 1 : vector<4x256xf32>, i32 -> vector<4x256xf32>
    %c8_71 = arith.constant 8 : index
    %c0_72 = arith.constant 0 : index
    %93 = vector.load %arg3[%c8_71, %c0_72] : memref<9x256xf32, #tpu.memory_space<vmem>>, vector<1x256xf32>
    %94 = vector.broadcast %93 : vector<1x256xf32> to vector<4x256xf32>
    %95 = arith.mulf %92, %94 : vector<4x256xf32>
    %c32_73 = arith.constant 32 : index
    %c0_74 = arith.constant 0 : index
    %96 = vector.load %arg11[%c32_73, %c0_74] : memref<36x256xf32, #tpu.memory_space<vmem>>, vector<4x256xf32>
    tpu.vector_store %arg11[%c32_73, %c0_74], %95 {strides = array<i32>} : memref<36x256xf32, #tpu.memory_space<vmem>>, vector<4x256xf32>,
    %c0_75 = arith.constant 0 : index
    %c0_76 = arith.constant 0 : index
    %97 = vector.load %arg11[%c0_75, %c0_76] : memref<36x256xf32, #tpu.memory_space<vmem>>, vector<36x256xf32>
    %98 = arith.truncf %97 : vector<36x256xf32> to vector<36x256xbf16>
    %cst_77 = arith.constant dense<0.000000e+00> : vector<4x256xf32>
    %99 = tpu.matmul %55, %98, %cst_77 {dimension_numbers = #tpu.dot_dimension_numbers<[1], [0], [0], [1], [0, 0, 1, 1], [], []>} : vector<4x36xbf16>, vector<36x256xbf16>, vector<4x256xf32> -> vector<4x256xf32>
    %c0_78 = arith.constant 0 : index
    %c0_79 = arith.constant 0 : index
    %100 = vector.load %arg8[%c0_78, %c0_79] : memref<4x1xf32, #tpu.memory_space<vmem>>, vector<4x1xf32>
    %101 = vector.broadcast %100 : vector<4x1xf32> to vector<4x256xf32>
    %102 = arith.mulf %99, %101 : vector<4x256xf32>
    %c0_80 = arith.constant 0 : index
    %c0_81 = arith.constant 0 : index
    %103 = vector.load %arg9[%c0_80, %c0_81] : memref<4x1xf32, #tpu.memory_space<vmem>>, vector<4x1xf32>
    %104 = vector.broadcast %103 : vector<4x1xf32> to vector<4x256xf32>
    %105 = arith.addf %102, %104 : vector<4x256xf32>
    %c0_82 = arith.constant 0 : index
    %c0_83 = arith.constant 0 : index
    %c0_84 = arith.constant 0 : index
    %106 = vector.load %arg2[%c0_82, %c0_83, %c0_84] : memref<1x4x256xf32, #tpu.memory_space<vmem>>, vector<1x4x256xf32>
    %107 = vector.shape_cast %106 : vector<1x4x256xf32> to vector<4x256xf32>
    %108 = arith.addf %105, %107 : vector<4x256xf32>
    %cst_85 = arith.constant 0.000000e+00 : f32
    %109 = vector.broadcast %cst_85 : f32 to vector<4x256xf32>
    %110 = arith.maximumf %108, %109 : vector<4x256xf32>
    %c0_86 = arith.constant 0 : index
    %c0_87 = arith.constant 0 : index
    %c0_88 = arith.constant 0 : index
    %111 = vector.load %arg10[%c0_86, %c0_87, %c0_88] : memref<1x4x256xf32, #tpu.memory_space<vmem>>, vector<1x4x256xf32>
    %112 = vector.shape_cast %111 : vector<1x4x256xf32> to vector<4x256xf32>
    %113 = vector.shape_cast %110 : vector<4x256xf32> to vector<1x4x256xf32>
    tpu.vector_store %arg10[%c0_86, %c0_87, %c0_88], %113 {strides = array<i32>} : memref<1x4x256xf32, #tpu.memory_space<vmem>>, vector<1x4x256xf32>,
    return
  }
  func.func @transform_0(%arg0: i32) -> (i32, i32, i32) {
    %c0_i32 = arith.constant 0 : i32
    %c0_i32_0 = arith.constant 0 : i32
    %c0_i32_1 = arith.constant 0 : i32
    return %arg0, %c0_i32, %c0_i32_0 : i32, i32, i32
  }
  func.func @transform_1(%arg0: i32) -> (i32, i32, i32) {
    %c0_i32 = arith.constant 0 : i32
    %c0_i32_0 = arith.constant 0 : i32
    %c0_i32_1 = arith.constant 0 : i32
    return %arg0, %c0_i32, %c0_i32_0 : i32, i32, i32
  }
  func.func @transform_2(%arg0: i32) -> (i32, i32) {
    %c0_i32 = arith.constant 0 : i32
    %c0_i32_0 = arith.constant 0 : i32
    %c0_i32_1 = arith.constant 0 : i32
    return %c0_i32, %c0_i32_0 : i32, i32
  }
  func.func @transform_3(%arg0: i32) -> (i32, i32) {
    %c0_i32 = arith.constant 0 : i32
    %c0_i32_0 = arith.constant 0 : i32
    %c0_i32_1 = arith.constant 0 : i32
    return %c0_i32, %c0_i32_0 : i32, i32
  }
  func.func @transform_4(%arg0: i32) -> (i32, i32) {
    %c0_i32 = arith.constant 0 : i32
    %c0_i32_0 = arith.constant 0 : i32
    %c0_i32_1 = arith.constant 0 : i32
    return %c0_i32, %c0_i32_0 : i32, i32
  }
  func.func @transform_5(%arg0: i32) -> (i32, i32) {
    %c0_i32 = arith.constant 0 : i32
    %c0_i32_0 = arith.constant 0 : i32
    %c0_i32_1 = arith.constant 0 : i32
    return %c0_i32, %c0_i32_0 : i32, i32
  }
  func.func @transform_6(%arg0: i32) -> (i32, i32) {
    %c0_i32 = arith.constant 0 : i32
    %c0_i32_0 = arith.constant 0 : i32
    %c0_i32_1 = arith.constant 0 : i32
    return %c0_i32, %c0_i32_0 : i32, i32
  }
  func.func @transform_7(%arg0: i32) -> (i32, i32) {
    %c0_i32 = arith.constant 0 : i32
    %c0_i32_0 = arith.constant 0 : i32
    %c0_i32_1 = arith.constant 0 : i32
    return %c0_i32, %c0_i32_0 : i32, i32
  }
  func.func @transform_8(%arg0: i32) -> (i32, i32) {
    %c0_i32 = arith.constant 0 : i32
    %c0_i32_0 = arith.constant 0 : i32
    %c0_i32_1 = arith.constant 0 : i32
    return %c0_i32, %c0_i32_0 : i32, i32
  }
  func.func @transform_9(%arg0: i32) -> (i32, i32, i32) {
    %c0_i32 = arith.constant 0 : i32
    %c0_i32_0 = arith.constant 0 : i32
    %c0_i32_1 = arith.constant 0 : i32
    return %arg0, %c0_i32, %c0_i32_0 : i32, i32, i32
  }
}

</mosaic_0001>

<bundles_post_ra>
// kernel: tpu_custom_call.1
= control target key start
LH: loop header
LB: loop body
LE: loop exit
PB: predicated region body
PF: predicated region fallthrough
CT: control target
= control target key end

     0   :  { %14 = vsyncpa [#allocation4], 0  ;;  %s1765_s0 = inlined_call_operand.vmem [shape: f32[2,4,256], index: 0, kind: input, shape index: {}]   ;;  %s1766_s1 = inlined_call_operand.hbm [shape: f32[2,4,256], index: 1, kind: input, shape index: {}]   ;;  %s1767_s2 = inlined_call_operand.hbm [shape: f32[9,256], index: 2, kind: input, shape index: {}]   ;;  %s1768_s3 = inlined_call_operand.vmem [shape: bf16[4,36], index: 3, kind: input, shape index: {}]   ;;  %s1769_s4 = inlined_call_operand.vmem [shape: f32[4,1], index: 4, kind: input, shape index: {}]   ;;  %s1770_s5 = inlined_call_operand.vmem [shape: f32[4,1], index: 5, kind: input, shape index: {}]   ;;  %s1771_s6 = inlined_call_operand.vmem [shape: bf16[4,36], index: 6, kind: input, shape index: {}]   ;;  %s1772_s7 = inlined_call_operand.vmem [shape: f32[4,1], index: 7, kind: input, shape index: {}]   ;;  %s1773_s8 = inlined_call_operand.vmem [shape: f32[4,1], index: 8, kind: input, shape index: {}]   ;;  %s1774_s9 = inlined_call_operand.hbm [shape: f32[2,4,256], index: 9, kind: output, shape index: {}]  }
   0x1   :  { %16 = vsyncpa [#allocation4 + $0x1], 0 }
   0x2   :  { %17 = vsyncpa [#allocation7], 0 }
   0x3   :  { %18 = vsyncpa [#allocation5], 0 }
   0x4   :  { %20 = vsyncpa [#allocation5 + $0x1], 0  ;;  %s1391_s30 = smov 0   ;;  %s1393_s10 = smov 0  }
   0x5   :  { %s1395_s11 = smov 0   ;;  %s1397_s12 = smov 0  }
   0x6 LB: > { %s1412_s13 = sadd.s32 4294967295, %s1325_s12   ;;  %s1100_s14 = sadd.s32 4294967294, %s1325_s12   ;;  %s1325_s12 = sphi %s1397_s12, %s1799_s12   ;;  %s1321_s11 = sphi %s1395_s11, %s1802_s11   ;;  %s1317_s10 = sphi %s1393_s10, %s1801_s10   ;;  %s1313_s30 = sphi %s1391_s30, %s1800_s30  }
   0x7   : > { %p72_p0 = scmp.ne.s32.totalorder %s1317_s10, %s1313_s30  ;;  %p1775_p1 = scmp.eq.s32.totalorder %s1412_s13, 0 }
   0x8   : > { %p249_p3 = scmp.eq.s32.totalorder %s1100_s14, 1  ;;  %p1101_p5 = scmp.ge.s32.totalorder %s1325_s12, 1 }
   0x9   : > { %p1421_p4 = por %p1775_p1, %p72_p0  ;;  %p256_p7 = scmp.lt.s32.totalorder %s1325_s12, 3 }
   0xa   : > { %p1426_p6 = por %p249_p3, %p72_p0  ;;  %s1327_s18 = smov [#allocation6]  }
   0xb   : > { %s1782_s15 = scalar_select %p1421_p4, 1, 0 }
   0xc   : > { %s1783_s16 = scalar_select %p1426_p6, 1, 0 }
   0xd   : > { %p1431_p8 = pnand %p1101_p5, %p256_p7  ;;  %s268_s19 = sshll.u32 %s1327_s18, 4  ;;  %s1435_s19 = int_to_ptr.vmem [resolvable:$true] %s268_s19 }
   0xe   : > { %1784 = sst [smem:[#allocation12_spill]] %s1783_s16  ;;  %s1447_s21 = sadd.s32 1, %s1325_s12  }
   0xf   : > { %s1785_s17 = scalar_select %p1431_p8, 1, 0 }
  0x10   : > { %p1133_p9 = pneg %p1431_p8  ;;  %1787 = sst [smem:[#allocation13_spill]] %s1447_s21 }
  0x11   : > { %s59_s22 = sadd.s32 1, %s1321_s11  ;;  %s56_s23 = ssub.s32 %s1325_s12, %s1447_s21 }
  0x12   : > { %p1442_p11 = pnand %p1133_p9, %p1775_p1  ;;  %s1197_s26 = scalar_lea.hbm %s1767_s2, 512 }
  0x13   : > { %p1198_p12 = scmp.ne.s32.totalorder %s1767_s2, %s1197_s26  ;;  %p1204_p5 = scmp.lt.u32.totalorder %s1197_s26, %s1767_s2 }
  0x14   : > { %p1199_p13 = pneg %p1442_p11 }
  0x16   : > { %p1200_p0 = pnand %p1199_p13, %p1198_p12 }
  0x18   : > { %p1201_p3 = pneg %p1200_p0 }
  0x1a   : > { %p1206_p7 = pnand %p1204_p5, %p1201_p3 }
  0x1c   : > { %1209 = shalt.err (!%p1206_p7)
}
  0x1d   : > { %s1210_s18 = scalar_lea.vmem %s1435_s19, 512  ;;  %p1218_p2 = scmp.lt.s32.totalorder %s1435_s19, %s1435_s19 }
  0x1e   : > { %p1211_p9 = scmp.ne.s32.totalorder %s1435_s19, %s1210_s18  ;;  %p1219_p6 = scmp.lt.s32.totalorder %s1210_s18, %s1210_s18 }
  0x20   : > { %p1213_p10 = pnand %p1211_p9, %p1199_p13  ;;  %p1220_p4 = por %p1219_p6, %p1218_p2 }
  0x22   : > { %p1214_p1 = pneg %p1213_p10 }
  0x24   : > { %p1221_p8 = pnand %p1220_p4, %p1214_p1 }
  0x26   : > { %1224 = shalt.err (!%p1221_p8)
}
  0x27   : > { %s1328_s24 = smov 256   ;;  %s1329_s25 = smov 16  }
  0x28   : > { %1136 = dma.hbm_to_vmem [thread:$0]  (!%p1442_p11), %s1767_s2, 512, %s1435_s19, [#allocation7], %s1328_s24, %s1328_s24, %s1329_s25  }
  0x29   : > { %p57_p2 = scmp.eq.s32.totalorder %s56_s23, 0  ;;  %p66_p1 = scmp.ne.s32.totalorder %s1321_s11, %s1317_s10 }
  0x2a   : > { %p67_p4 = scmp.eq.s32.totalorder %s1325_s12, 0  ;;  %p1146_p6 = scmp.lt.s32.totalorder %s1325_s12, 2 }
  0x2b   : > { %s1478_s28 = scalar_select %p57_p2, %s1321_s11, %s59_s22  }
  0x2c   : > { %p68_p8 = por %p67_p4, %p66_p1  ;;  %p1788_p10 = scmp.eq.s32.totalorder %s1412_s13, 1 }
  0x2d   : > { %s308_s14 = sand.u32 1, %s1321_s11   ;;  %s1122_s18 = sshll.u32 %s1325_s12, 7 }
  0x2e   : > { %p1482_p12 = por %p1788_p10, %p66_p1  ;;  %s1104_s21 = sshll.u32 %s308_s14, 3 }
  0x2f   : > { %s1491_s26 = scalar_lea.hbm %s1766_s1, %s1122_s18  ;;  %s312_s19 = scalar_lea.vmem [#allocation3], %s1104_s21 }
  0x30   : > { %s320_s22 = sshll.u32 %s312_s19, 4  ;;  %p1493_p11 = pnand %p1146_p6, %p68_p8  ;;  %s1497_s22 = int_to_ptr.vmem [resolvable:$true] %s320_s22 }
  0x31   : > { %s309_s24 = scalar_lea.sflag [#allocation4], %s308_s14  ;;  %s1225_s25 = scalar_lea.hbm %s1491_s26, 128 }
  0x32   : > { %p1226_p13 = scmp.ne.s32.totalorder %s1491_s26, %s1225_s25  ;;  %p1227_p0 = pneg %p1493_p11 }
  0x33   : > { %s1230_s27 = scalar_lea.hbm %s1766_s1, 256  ;;  %p1231_p7 = scmp.lt.u32.totalorder %s1491_s26, %s1766_s1 }
  0x34   : > { %p1228_p3 = pnand %p1227_p0, %p1226_p13  ;;  %p1232_p9 = scmp.lt.u32.totalorder %s1230_s27, %s1225_s25 }
  0x35   : > { %p1234_p1 = scmp.lt.u32.totalorder %s1225_s25, %s1491_s26 }
  0x36   : > { %p1229_p5 = pneg %p1228_p3  ;;  %p1233_p2 = por %p1232_p9, %p1231_p7 }
  0x38   : > { %p1235_p4 = por %p1234_p1, %p1233_p2 }
  0x3a   : > { %p1236_p6 = pnand %p1235_p4, %p1229_p5 }
  0x3c   : > { %1239 = shalt.err (!%p1236_p6)
}
  0x3d   : > { %s1240_s14 = scalar_lea.vmem %s1497_s22, 128  ;;  %s1330_s19 = smov [#allocation3]  }
  0x3e   : > { %p1241_p8 = scmp.ne.s32.totalorder %s1497_s22, %s1240_s14  ;;  %s1245_s16 = sshll.u32 %s1330_s19, 4  ;;  %s1246_s16 = int_to_ptr.vmem [resolvable:$false] %s1245_s16 }
  0x3f   : > { %s1247_s21 = scalar_lea.vmem %s1246_s16, 256  ;;  %p1248_p3 = scmp.lt.s32.totalorder %s1497_s22, %s1246_s16 }
  0x40   : > { %p1243_p10 = pnand %p1241_p8, %p1227_p0  ;;  %p1249_p7 = scmp.lt.s32.totalorder %s1247_s21, %s1240_s14 }
  0x42   : > { %p1244_p13 = pneg %p1243_p10  ;;  %p1250_p9 = por %p1249_p7, %p1248_p3 }
  0x44   : > { %p1251_p2 = pnand %p1250_p9, %p1244_p13 }
  0x46   : > { %1254 = shalt.err (!%p1251_p2)
}
  0x47   : > { %1140 = dma.hbm_to_vmem [thread:$0]  (!%p1493_p11), %s1491_s26, 128, %s1497_s22, %s309_s24  }
  0x48   : > { %p1791_p5 = scmp.ne.s32.totalorder %s1785_s17, 0 }
  0x49   : > { %s1527_s25 = sand.u32 (!%p1791_p5), 1, %s1317_s10   ;;  %p1792_p0 = scmp.ne.s32.totalorder (!%p1791_p5), %s1782_s15, 0 }
  0x4a   : > { %329 = sbr.rel (%p1791_p5) target bundleno = 868 (0x364), region = 56  ;;  %s1781_s27 = sshll.u32 (!%p1791_p5), %s1527_s25, 3 }
  0x4b   : > { %s332_s18 = scalar_lea.sflag (!%p1791_p5), [#allocation4], %s1527_s25  ;;  %s1533_s20 = scalar_lea.vmem (!%p1791_p5), [#allocation3], %s1781_s27 }
  0x51   : > { %1300 = dma.done.wait (%p1792_p0), %s332_s18, 128  }
  0x52   : > { %1302 = vsyncadd (%p1792_p0), %s332_s18, 4294967168  ;;  %p1793_p11 = scmp.eq.s32.totalorder %s1412_s13, 0 }
  0x54   : > { %1304 = dma.done.wait (%p1793_p11), [#allocation7], 512   ;;  %p1794_p1 = pmov %p1793_p11 }
  0x55   : > { %p379_p4 = scmp.lt.s32.totalorder %s1412_s13, 1  ;;  %s1331_s14 = smov 1   ;;  %v1339_v2 = vmov 0   ;;  %v677_v3 = vld [vmem:[%s1769_s4] sm:$0xf]  ;;  %v394_v5 = vlaneseq  ;;  %vm629_vm8 = vcmask 1041408  }
  0x56   : > { %1306 = vsyncadd (%p1794_p1), [#allocation7], 4294966784  ;;  %s1332_s15 = smov 16   ;;  %s1333_s19 = smov 17   ;;  %668 = vmatprep.mubr.bf16.mxu0 %v1339_v2  ;;  %1193 = vset.pattern.permute.xlu0 %v1339_v2  ;;  %v685_v4 = vld [vmem:[%s1770_s5] sm:$0xf] }
  0x57   : > { %s380_s17 = scalar_select %p379_p4, %s1412_s13, 1  ;;  %1194 = vset.pattern.permute.xlu1 %v1339_v2  ;;  %955 = vmatprep.mubr.bf16.mxu1 %v1339_v2  ;;  %v402_v6 = vshrl.u32 %v394_v5, 7  ;;  %v1570_v7 = vand.u32 127, %v394_v5  ;;  %v477_v10 = vld [vmem:[#allocation6 + $0x3] ss:$8 sm:$0x3] }
  0x58   : > { %s1334_s16 = smov 15   ;;  %s1335_s21 = smov 127   ;;  %v399_v15 = vld [vmem:[#allocation6] ss:$8 sm:$0x3]  ;;  %vm625_vm9 = vcmask 293888  }
  0x59   : > { %s1123_s26 = sshll.u32 %s380_s17, 3  ;;  %s1336_s18 = smov 112   ;;  %v1572_v8 = vsub.s32 0, %v402_v6  ;;  %v1574_v9 = vsub.s32 1, %v402_v6  ;;  %vm473_vm0 = vcmp.lt.s32.totalorder %v1570_v7, 1  ;;  %vm396_vm1 = vcmp.lt.s32.totalorder %v1570_v7, 17 }
  0x5a   : > { %s383_s24 = scalar_lea.vmem %s1765_s0, %s1123_s26  ;;  %s1337_s17 = smov 113   ;;  %v423_v16 = vld [vmem:[#allocation6 + $0x1] ss:$8 sm:$0x3]  ;;  %vm419_vm2 = vcmp.lt.s32.totalorder %v1570_v7, 16  ;;  %vm449_vm3 = vcmp.lt.s32.totalorder %v1570_v7, 15 }
  0x5b   : > { %v385_v0 = vld [vmem:[%s383_s24] sm:$0xff]  ;;  %s1338_s26 = smov 111   ;;  %v482_v13 = vrot.slane %v477_v10, %v1572_v8  ;;  %v486_v14 = vrot.slane %v477_v10, %v1574_v9  ;;  %v404_v21 = vrot.slane %v399_v15, %v1572_v8  ;;  %v408_v22 = vrot.slane %v399_v15, %v1574_v9 }
  0x5c   : > { %469 = vrot.lane.b32.xlu1 %v385_v0, %s1331_s14  ;;  %499 = vst [vmem:[#allocation2 + $0x20] sm:$0xf] %v385_v0  ;;  %415 = vrot.lane.b32.xlu0 %v385_v0, %s1332_s15  ;;  %v388_v1 = vcombine.high %v385_v0, %v385_v0  ;;  %v453_v23 = vld [vmem:[#allocation6 + $0x2] ss:$8 sm:$0x3]  ;;  %v428_v26 = vrot.slane %v423_v16, %v1572_v8  ;;  %vm505_vm4 = vcmp.lt.s32.totalorder %v1570_v7, 127 }
  0x5d   : > { %v432_v27 = vrot.slane %v423_v16, %v1574_v9  ;;  %v458_v32 = vrot.slane %v453_v23, %v1572_v8  ;;  %v462_v33 = vrot.slane %v453_v23, %v1574_v9  ;;  %v509_v42 = vld [vmem:[#allocation6 + $0x5] ss:$8 sm:$0x3]  ;;  %v563_v53 = vld [vmem:[#allocation6 + $0x7] ss:$8 sm:$0x3] }
  0x5e   : > { %500 = vst [vmem:[#allocation2 + $0x28] sm:$0xf] %v388_v1  ;;  %v514_v51 = vrot.slane %v509_v42, %v1572_v8  ;;  %v518_v52 = vrot.slane %v509_v42, %v1574_v9  ;;  %vm559_vm5 = vcmp.lt.s32.totalorder %v1570_v7, 112  ;;  %v568_v60 = vrot.slane %v563_v53, %v1572_v8  ;;  %v539_v62 = vld [vmem:[#allocation6 + $0x6] ss:$8 sm:$0x3] }
  0x5f   : > { %v572_v61 = vrot.slane %v563_v53, %v1574_v9  ;;  %vm535_vm6 = vcmp.lt.s32.totalorder %v1570_v7, 113  ;;  %v544_v10 = vrot.slane %v539_v62, %v1572_v8  ;;  %vm589_vm7 = vcmp.lt.s32.totalorder %v1570_v7, 111 }
  0x60   : > { %390 = vrot.lane.b32.xlu0 %v385_v0, %s1333_s19  ;;  %471 = vrot.lane.b32.xlu1 %v388_v1, %s1331_s14 }
  0x64   : > { %392 = vrot.lane.b32.xlu1 %v388_v1, %s1333_s19  ;;  %417 = vrot.lane.b32.xlu0 %v388_v1, %s1332_s15 }
  0x68   : > { %447 = vrot.lane.b32.xlu1 %v388_v1, %s1334_s16  ;;  %445 = vrot.lane.b32.xlu0 %v385_v0, %s1334_s16 }
  0x6c   : > { %503 = vrot.lane.b32.xlu1 %v388_v1, %s1335_s21  ;;  %501 = vrot.lane.b32.xlu0 %v385_v0, %s1335_s21 }
  0x70   : > { %557 = vrot.lane.b32.xlu1 %v388_v1, %s1336_s18  ;;  %555 = vrot.lane.b32.xlu0 %v385_v0, %s1336_s18 }
  0x74   : > { %533 = vrot.lane.b32.xlu1 %v388_v1, %s1337_s17  ;;  %531 = vrot.lane.b32.xlu0 %v385_v0, %s1337_s17 }
  0x78   : > { %587 = vrot.lane.b32.xlu1 %v388_v1, %s1338_s26  ;;  %585 = vrot.lane.b32.xlu0 %v385_v0, %s1338_s26 }
  0x7c   : > { %680 = vperm.xlu0 %1193, %v677_v3   ;;  %688 = vperm.xlu1 %1194, %v685_v4  }
  0xce   : > { %v470_v11 = vpop.permute.xlu1 %469  ;;  %v416_v12 = vpop.permute.xlu0 %415 }
  0xd2   : > { %v391_v17 = vpop.permute.xlu0 %390  ;;  %v472_v18 = vpop.permute.xlu1 %471 }
  0xd3   : > { %v474_v19 = vsel %vm473_vm0, %v470_v11, %v472_v18  ;;  %v475_v20 = vsel %vm473_vm0, %v472_v18, %v470_v11  ;;  %v548_v11 = vrot.slane %v539_v62, %v1574_v9 }
  0xd4   : > { %v489_v24 = vmul.f32 %v482_v13, %v475_v20  ;;  %v490_v25 = vmul.f32 %v486_v14, %v474_v19  ;;  %v593_v13 = vld [vmem:[#allocation6 + $0x10] ss:$8 sm:$0x3] }
  0xd6   : > { %v493_v28 = vrot.slane %v489_v24, 4  ;;  %v494_v29 = vrot.slane %v490_v25, 4  ;;  %v393_v30 = vpop.permute.xlu1 %392  ;;  %v418_v31 = vpop.permute.xlu0 %417 }
  0xd7   : > { %v397_v34 = vsel %vm396_vm1, %v391_v17, %v393_v30  ;;  %v398_v35 = vsel %vm396_vm1, %v393_v30, %v391_v17  ;;  %v420_v36 = vsel %vm419_vm2, %v416_v12, %v418_v31  ;;  %v421_v37 = vsel %vm419_vm2, %v418_v31, %v416_v12 }
  0xd8   : > { %497 = vst [vmem:[#allocation2 + $0x10] sm:$0xf0] %v493_v28  ;;  %498 = vst [vmem:[#allocation2 + $0x18] sm:$0xf0] %v494_v29  ;;  %v411_v38 = vmul.f32 %v404_v21, %v398_v35  ;;  %v412_v39 = vmul.f32 %v408_v22, %v397_v34  ;;  %v435_v40 = vmul.f32 %v428_v26, %v421_v37 }
  0xd9   : > { %v436_v41 = vmul.f32 %v432_v27, %v420_v36  ;;  %v598_v27 = vrot.slane %v593_v13, %v1572_v8  ;;  %v602_v28 = vrot.slane %v593_v13, %v1574_v9  ;;  %v702_v13 = vld [vmem:[#allocation6] ss:$8 sm:$0x3] }
  0xda   : > { %413 = vst [vmem:[#allocation2] sm:$0xf] %v411_v38  ;;  %414 = vst [vmem:[#allocation2 + $0x8] sm:$0xf] %v412_v39  ;;  %v439_v43 = vrot.slane %v435_v40, 4  ;;  %v448_v45 = vpop.permute.xlu1 %447  ;;  %v446_v46 = vpop.permute.xlu0 %445 }
  0xdb   : > { %v440_v44 = vrot.slane %v436_v41, 4  ;;  %v450_v47 = vsel %vm449_vm3, %v446_v46, %v448_v45  ;;  %v451_v48 = vsel %vm449_vm3, %v448_v45, %v446_v46  ;;  %v386_v46 = vld [vmem:[%s1768_s3] sm:$0x3] }
  0xdc   : > { %443 = vst [vmem:[#allocation2] sm:$0xf0] %v439_v43  ;;  %v465_v49 = vmul.f32 %v458_v32, %v451_v48  ;;  %v466_v50 = vmul.f32 %v462_v33, %v450_v47 }
  0xdd   : > { %444 = vst [vmem:[#allocation2 + $0x8] sm:$0xf0] %v440_v44 }
  0xde   : > { %467 = vst [vmem:[#allocation2 + $0x10] sm:$0xf] %v465_v49  ;;  %468 = vst [vmem:[#allocation2 + $0x18] sm:$0xf] %v466_v50  ;;  %v504_v54 = vpop.permute.xlu1 %503  ;;  %v502_v55 = vpop.permute.xlu0 %501 }
  0xdf   : > { %v506_v56 = vsel %vm505_vm4, %v502_v55, %v504_v54  ;;  %v507_v57 = vsel %vm505_vm4, %v504_v54, %v502_v55 }
  0xe0   : > { %v521_v58 = vmul.f32 %v514_v51, %v506_v56  ;;  %v522_v59 = vmul.f32 %v518_v52, %v507_v57 }
  0xe2   : > { %v525_v63 = vrot.slane %v521_v58, 4  ;;  %v526_v0 = vrot.slane %v522_v59, 4  ;;  %v558_v1 = vpop.permute.xlu1 %557  ;;  %v556_v2 = vpop.permute.xlu0 %555  ;;  %v964_v59 = vld [vmem:[%s1772_s7] sm:$0xf] }
  0xe3   : > { %v560_v3 = vsel %vm559_vm5, %v556_v2, %v558_v1  ;;  %v561_v4 = vsel %vm559_vm5, %v558_v1, %v556_v2  ;;  %v609_v15 = vld [vmem:[#allocation2] sm:$0xff] }
  0xe4   : > { %529 = vst [vmem:[#allocation2 + $0x20] sm:$0xf0] %v525_v63  ;;  %530 = vst [vmem:[#allocation2 + $0x28] sm:$0xf0] %v526_v0  ;;  %v575_v5 = vmul.f32 %v568_v60, %v560_v3  ;;  %v576_v6 = vmul.f32 %v572_v61, %v561_v4  ;;  %v610_v12 = vld [vmem:[#allocation2 + $0x8] sm:$0xff] }
  0xe5   : > { %v612_v14 = vld [vmem:[#allocation2 + $0x18] sm:$0xff]  ;;  %v611_v16 = vld [vmem:[#allocation2 + $0x10] sm:$0xff]  ;;  %v972_v60 = vld [vmem:[%s1773_s8] sm:$0xf] }
  0xe6   : > { %v579_v17 = vrot.slane %v575_v5, 4  ;;  %v580_v18 = vrot.slane %v576_v6, 4  ;;  %v534_v19 = vpop.permute.xlu1 %533  ;;  %v532_v20 = vpop.permute.xlu0 %531  ;;  %v620_v21 = vpack.c.bf16 %v612_v14, %v610_v12  ;;  %v619_v22 = vpack.c.bf16 %v611_v16, %v609_v15  ;;  %v724_v61 = vld [vmem:[#allocation6 + $0x1] ss:$8 sm:$0x3] }
  0xe7   : > { %v536_v23 = vsel %vm535_vm6, %v532_v20, %v534_v19  ;;  %v537_v24 = vsel %vm535_vm6, %v534_v19, %v532_v20  ;;  %v729_v62 = vrot.slane %v724_v61, %v1572_v8  ;;  %v733_v63 = vrot.slane %v724_v61, %v1574_v9  ;;  %v774_v1 = vld [vmem:[#allocation6 + $0x3] ss:$8 sm:$0x3] }
  0xe8   : > { %583 = vst [vmem:[#allocation2 + $0x30] sm:$0xf0] %v579_v17  ;;  %584 = vst [vmem:[#allocation2 + $0x38] sm:$0xf0] %v580_v18  ;;  %v551_v25 = vmul.f32 %v544_v10, %v536_v23  ;;  %v552_v26 = vmul.f32 %v548_v11, %v537_v24  ;;  %636 = vmatprep.subr.bf16.mxu0 %v620_v21  ;;  %v779_v10 = vrot.slane %v774_v1, %v1572_v8 }
  0xe9   : > { %637 = vmatpush1.bf16.msra.mxu0 %v619_v22  ;;  %v783_v11 = vrot.slane %v774_v1, %v1574_v9  ;;  %v707_v21 = vrot.slane %v702_v13, %v1572_v8  ;;  %v711_v22 = vrot.slane %v702_v13, %v1574_v9  ;;  %v752_v24 = vld [vmem:[#allocation6 + $0x2] ss:$8 sm:$0x3] }
  0xea   : > { %553 = vst [vmem:[#allocation2 + $0x30] sm:$0xf] %v551_v25  ;;  %554 = vst [vmem:[#allocation2 + $0x38] sm:$0xf] %v552_v26  ;;  %v588_v29 = vpop.permute.xlu1 %587  ;;  %v586_v30 = vpop.permute.xlu0 %585 }
  0xeb   : > { %v590_v31 = vsel %vm589_vm7, %v586_v30, %v588_v29  ;;  %v591_v32 = vsel %vm589_vm7, %v588_v29, %v586_v30  ;;  %v614_v35 = vld [vmem:[#allocation2 + $0x28] sm:$0xff]  ;;  %v613_v37 = vld [vmem:[#allocation2 + $0x20] sm:$0xff] }
  0xec   : > { %v605_v33 = vmul.f32 %v598_v27, %v590_v31  ;;  %v606_v34 = vmul.f32 %v602_v28, %v591_v32  ;;  %v757_v32 = vrot.slane %v752_v24, %v1572_v8 }
  0xee   : > { %607 = vst [vmem:[#allocation2 + $0x40] sm:$0xf] %v605_v33  ;;  %608 = vst [vmem:[#allocation2 + $0x48] sm:$0xf] %v606_v34  ;;  %v761_v33 = vrot.slane %v752_v24, %v1574_v9 }
  0xf1   : > { %v616_v36 = vld [vmem:[#allocation2 + $0x38] sm:$0xff]  ;;  %v615_v38 = vld [vmem:[#allocation2 + $0x30] sm:$0xff] }
  0xf2   : > { %v622_v39 = vpack.c.bf16 %v616_v36, %v614_v35  ;;  %v621_v40 = vpack.c.bf16 %v615_v38, %v613_v37  ;;  %v804_v35 = vld [vmem:[#allocation6 + $0x5] ss:$8 sm:$0x3] }
  0xf4   : > { %638 = vmatprep.subr.bf16.mxu0 %v622_v39 }
  0xf5   : > { %639 = vmatpush1.bf16.msra.mxu0 %v621_v40  ;;  %v618_v41 = vld [vmem:[#allocation2 + $0x48] sm:$0xf]  ;;  %v617_v42 = vld [vmem:[#allocation2 + $0x40] sm:$0xf] }
  0xf6   : > { %v624_v43 = vpack.c.bf16 %v618_v41, %v618_v41  ;;  %v623_v44 = vpack.c.bf16 %v617_v42, %v617_v42  ;;  %v809_v41 = vrot.slane %v804_v35, %v1572_v8  ;;  %v813_v42 = vrot.slane %v804_v35, %v1574_v9 }
  0xf8   : > { %1113 = vmatprep.subr.msk.bf16.mxu0 %vm629_vm8, %v624_v43  ;;  %v631_v45 = vsel %vm629_vm8, %v623_v44, 0  ;;  %v854_v44 = vld [vmem:[#allocation6 + $0x7] ss:$8 sm:$0x3] }
  0xf9   : > { %641 = vmatpush1.bf16.msra.mxu0 %v631_v45 }
  0xfb   : > { %v681_v47 = vpop.permute.xlu0 %680  ;;  %v689_v49 = vpop.permute.xlu1 %688 }
  0xfc   : > { %1114 = vmatmul.mubr.msk.bf16.vlgmr.msra.gmra.mrb[0].mxu0 %vm625_vm9, %v386_v46 }
 0x1cf   : > { %v670_v48 = vpop.f32.mrb[0].mxu0 }
 0x1d0   : > { %v683_v50 = vmul.f32 %v681_v47, %v670_v48  ;;  %v672_v51 = vpop.f32.mrb[1].mxu0 }
 0x1d1   : > { %v684_v52 = vmul.f32 %v681_v47, %v672_v51  ;;  %v674_v53 = vpop.f32.mrb[2].mxu0  ;;  %v863_v51 = vrot.slane %v854_v44, %v1574_v9 }
 0x1d2   : > { %v691_v54 = vadd.f32 %v689_v49, %v683_v50  ;;  %v675_v55 = vpop.f32.mrb[3].mxu0  ;;  %v859_v50 = vrot.slane %v854_v44, %v1572_v8  ;;  %v832_v53 = vld [vmem:[#allocation6 + $0x6] ss:$8 sm:$0x3] }
 0x1d3   : > { %v692_v56 = vadd.f32 %v689_v49, %v684_v52  ;;  %v837_v61 = vrot.slane %v832_v53, %v1572_v8 }
 0x1d4   : > { %v693_v57 = vmax.f32 %v691_v54, 0.0 }
 0x1d5   : > { %v694_v58 = vmax.f32 %v692_v56, 0.0 }
 0x1d6   : > { %796 = vst [vmem:[#allocation2 + $0x20] sm:$0xf] %v693_v57  ;;  %718 = vrot.lane.b32.xlu1 %v693_v57, %s1332_s15 }
 0x1d7   : > { %797 = vst [vmem:[#allocation2 + $0x28] sm:$0xf] %v694_v58  ;;  %720 = vrot.lane.b32.xlu0 %v694_v58, %s1332_s15 }
 0x1da   : > { %768 = vrot.lane.b32.xlu1 %v693_v57, %s1331_s14 }
 0x1db   : > { %770 = vrot.lane.b32.xlu0 %v694_v58, %s1331_s14  ;;  %s994_s14 = scalar_lea.sflag [#allocation5], %s1527_s25 }
 0x1de   : > { %696 = vrot.lane.b32.xlu1 %v693_v57, %s1333_s19 }
 0x1df   : > { %698 = vrot.lane.b32.xlu0 %v694_v58, %s1333_s19 }
 0x1e2   : > { %746 = vrot.lane.b32.xlu1 %v693_v57, %s1334_s16 }
 0x1e3   : > { %748 = vrot.lane.b32.xlu0 %v694_v58, %s1334_s16 }
 0x1e6   : > { %798 = vrot.lane.b32.xlu1 %v693_v57, %s1335_s21 }
 0x1e7   : > { %800 = vrot.lane.b32.xlu0 %v694_v58, %s1335_s21 }
 0x1ea   : > { %848 = vrot.lane.b32.xlu1 %v693_v57, %s1336_s18 }
 0x1eb   : > { %850 = vrot.lane.b32.xlu0 %v694_v58, %s1336_s18 }
 0x1ee   : > { %826 = vrot.lane.b32.xlu1 %v693_v57, %s1337_s17 }
 0x1ef   : > { %828 = vrot.lane.b32.xlu0 %v694_v58, %s1337_s17  ;;  %s1124_s17 = sshll.u32 %s1412_s13, 7  ;;  %s1340_s13 = smov [#allocation8]  }
 0x1f0   : > { %s1721_s22 = scalar_lea.hbm %s1774_s9, %s1124_s17  ;;  %s1259_s19 = sshll.u32 %s1340_s13, 4  ;;  %s1260_s19 = int_to_ptr.vmem [resolvable:$false] %s1259_s19 }
 0x1f1   : > { %s1261_s16 = scalar_lea.vmem %s1260_s19, 256 }
 0x1f2   : > { %876 = vrot.lane.b32.xlu1 %v693_v57, %s1338_s26 }
 0x1f3   : > { %878 = vrot.lane.b32.xlu0 %v694_v58, %s1338_s26  ;;  %s1795_s26 = sshll.u32 %s1527_s25, 3 }
 0x1f6   : > { %967 = vperm.xlu1 %1194, %v964_v59  }
 0x1f7   : > { %975 = vperm.xlu0 %1193, %v972_v60  }
 0x248   : > { %v719_v0 = vpop.permute.xlu1 %718 }
 0x249   : > { %v721_v2 = vpop.permute.xlu0 %720 }
 0x24a   : > { %v722_v3 = vsel %vm419_vm2, %v719_v0, %v721_v2  ;;  %v723_v4 = vsel %vm419_vm2, %v721_v2, %v719_v0  ;;  %v882_v0 = vld [vmem:[#allocation6 + $0x10] ss:$8 sm:$0x3] }
 0x24b   : > { %v736_v5 = vmul.f32 %v729_v62, %v723_v4  ;;  %v737_v6 = vmul.f32 %v733_v63, %v722_v3  ;;  %v841_v62 = vrot.slane %v832_v53, %v1574_v9 }
 0x24c   : > { %v769_v12 = vpop.permute.xlu1 %768 }
 0x24d   : > { %v740_v14 = vrot.slane %v736_v5, 4  ;;  %v741_v15 = vrot.slane %v737_v6, 4  ;;  %v771_v16 = vpop.permute.xlu0 %770 }
 0x24e   : > { %v772_v17 = vsel %vm473_vm0, %v769_v12, %v771_v16  ;;  %v773_v18 = vsel %vm473_vm0, %v771_v16, %v769_v12 }
 0x24f   : > { %744 = vst [vmem:[#allocation2] sm:$0xf0] %v740_v14  ;;  %745 = vst [vmem:[#allocation2 + $0x8] sm:$0xf0] %v741_v15  ;;  %v786_v19 = vmul.f32 %v779_v10, %v773_v18  ;;  %v787_v20 = vmul.f32 %v783_v11, %v772_v17  ;;  %v887_v17 = vrot.slane %v882_v0, %v1572_v8 }
 0x250   : > { %v697_v23 = vpop.permute.xlu1 %696  ;;  %v891_v18 = vrot.slane %v882_v0, %v1574_v9 }
 0x251   : > { %v790_v25 = vrot.slane %v786_v19, 4  ;;  %v791_v26 = vrot.slane %v787_v20, 4  ;;  %v699_v27 = vpop.permute.xlu0 %698 }
 0x252   : > { %v700_v28 = vsel %vm396_vm1, %v697_v23, %v699_v27  ;;  %v701_v29 = vsel %vm396_vm1, %v699_v27, %v697_v23 }
 0x253   : > { %794 = vst [vmem:[#allocation2 + $0x10] sm:$0xf0] %v790_v25  ;;  %795 = vst [vmem:[#allocation2 + $0x18] sm:$0xf0] %v791_v26  ;;  %v714_v30 = vmul.f32 %v707_v21, %v701_v29  ;;  %v715_v31 = vmul.f32 %v711_v22, %v700_v28 }
 0x254   : > { %v747_v34 = vpop.permute.xlu1 %746 }
 0x255   : > { %716 = vst [vmem:[#allocation2] sm:$0xf] %v714_v30  ;;  %717 = vst [vmem:[#allocation2 + $0x8] sm:$0xf] %v715_v31  ;;  %v749_v36 = vpop.permute.xlu0 %748 }
 0x256   : > { %v750_v37 = vsel %vm449_vm3, %v747_v34, %v749_v36  ;;  %v751_v38 = vsel %vm449_vm3, %v749_v36, %v747_v34  ;;  %v980_v34 = vld [vmem:[%s1533_s20] sm:$0xff]  ;;  %s378_s20 = scalar_lea.vmem [#allocation8], %s1795_s26 }
 0x257   : > { %v764_v39 = vmul.f32 %v757_v32, %v751_v38  ;;  %v765_v40 = vmul.f32 %v761_v33, %v750_v37  ;;  %v695_v33 = vld [vmem:[%s1771_s6] sm:$0x3]  ;;  %s1008_s23 = sshll.u32 %s378_s20, 4  ;;  %s1723_s23 = int_to_ptr.vmem [resolvable:$true] %s1008_s23 }
 0x258   : > { %v799_v43 = vpop.permute.xlu1 %798  ;;  %s1255_s15 = scalar_lea.vmem %s1723_s23, 128  ;;  %p1262_p13 = scmp.lt.s32.totalorder %s1723_s23, %s1260_s19 }
 0x259   : > { %766 = vst [vmem:[#allocation2 + $0x10] sm:$0xf] %v764_v39  ;;  %767 = vst [vmem:[#allocation2 + $0x18] sm:$0xf] %v765_v40  ;;  %v801_v45 = vpop.permute.xlu0 %800  ;;  %p1256_p6 = scmp.ne.s32.totalorder %s1723_s23, %s1255_s15  ;;  %p1263_p3 = scmp.lt.s32.totalorder %s1261_s16, %s1255_s15 }
 0x25a   : > { %v802_v46 = vsel %vm505_vm4, %v799_v43, %v801_v45  ;;  %v803_v47 = vsel %vm505_vm4, %v801_v45, %v799_v43 }
 0x25b   : > { %v816_v48 = vmul.f32 %v809_v41, %v802_v46  ;;  %v817_v49 = vmul.f32 %v813_v42, %v803_v47  ;;  %v982_v41 = vcombine.high %v980_v34, %v980_v34  ;;  %p1257_p8 = pnand %p1256_p6, %p1482_p12  ;;  %p1264_p7 = por %p1263_p3, %p1262_p13 }
 0x25c   : > { %v849_v52 = vpop.permute.xlu1 %848  ;;  %v899_v63 = vld [vmem:[#allocation2 + $0x8] sm:$0xff]  ;;  %v898_v3 = vld [vmem:[#allocation2] sm:$0xff] }
 0x25d   : > { %v820_v54 = vrot.slane %v816_v48, 4  ;;  %v821_v55 = vrot.slane %v817_v49, 4  ;;  %v851_v56 = vpop.permute.xlu0 %850  ;;  %p1258_p10 = pneg %p1257_p8 }
 0x25e   : > { %v852_v57 = vsel %vm559_vm5, %v849_v52, %v851_v56  ;;  %v853_v58 = vsel %vm559_vm5, %v851_v56, %v849_v52 }
 0x25f   : > { %824 = vst [vmem:[#allocation2 + $0x20] sm:$0xf0] %v820_v54  ;;  %825 = vst [vmem:[#allocation2 + $0x28] sm:$0xf0] %v821_v55  ;;  %v866_v59 = vmul.f32 %v859_v50, %v852_v57  ;;  %v867_v60 = vmul.f32 %v863_v51, %v853_v58  ;;  %p1265_p9 = pnand %p1264_p7, %p1258_p10 }
 0x260   : > { %v827_v1 = vpop.permute.xlu1 %826  ;;  %v901_v2 = vld [vmem:[#allocation2 + $0x18] sm:$0xff]  ;;  %v900_v4 = vld [vmem:[#allocation2 + $0x10] sm:$0xff] }
 0x261   : > { %v870_v5 = vrot.slane %v866_v59, 4  ;;  %v871_v6 = vrot.slane %v867_v60, 4  ;;  %v829_v10 = vpop.permute.xlu0 %828  ;;  %v909_v11 = vpack.c.bf16 %v901_v2, %v899_v63  ;;  %v908_v12 = vpack.c.bf16 %v900_v4, %v898_v3 }
 0x262   : > { %v830_v13 = vsel %vm535_vm6, %v827_v1, %v829_v10  ;;  %v831_v14 = vsel %vm535_vm6, %v829_v10, %v827_v1 }
 0x263   : > { %874 = vst [vmem:[#allocation2 + $0x30] sm:$0xf0] %v870_v5  ;;  %875 = vst [vmem:[#allocation2 + $0x38] sm:$0xf0] %v871_v6  ;;  %v844_v15 = vmul.f32 %v837_v61, %v830_v13  ;;  %v845_v16 = vmul.f32 %v841_v62, %v831_v14  ;;  %923 = vmatprep.subr.bf16.mxu1 %v909_v11 }
 0x264   : > { %v877_v19 = vpop.permute.xlu1 %876  ;;  %924 = vmatpush1.bf16.msra.mxu1 %v908_v12 }
 0x265   : > { %846 = vst [vmem:[#allocation2 + $0x30] sm:$0xf] %v844_v15  ;;  %847 = vst [vmem:[#allocation2 + $0x38] sm:$0xf] %v845_v16  ;;  %v879_v20 = vpop.permute.xlu0 %878 }
 0x266   : > { %v880_v21 = vsel %vm589_vm7, %v877_v19, %v879_v20  ;;  %v881_v22 = vsel %vm589_vm7, %v879_v20, %v877_v19  ;;  %v903_v25 = vld [vmem:[#allocation2 + $0x28] sm:$0xff]  ;;  %v902_v8 = vld [vmem:[#allocation2 + $0x20] sm:$0xff] }
 0x267   : > { %v894_v23 = vmul.f32 %v887_v17, %v880_v21  ;;  %v895_v24 = vmul.f32 %v891_v18, %v881_v22 }
 0x269   : > { %896 = vst [vmem:[#allocation2 + $0x40] sm:$0xf] %v894_v23  ;;  %897 = vst [vmem:[#allocation2 + $0x48] sm:$0xf] %v895_v24 }
 0x26c   : > { %v905_v26 = vld [vmem:[#allocation2 + $0x38] sm:$0xff]  ;;  %v904_v9 = vld [vmem:[#allocation2 + $0x30] sm:$0xff] }
 0x26d   : > { %v911_v27 = vpack.c.bf16 %v905_v26, %v903_v25  ;;  %v910_v28 = vpack.c.bf16 %v904_v9, %v902_v8 }
 0x26f   : > { %925 = vmatprep.subr.bf16.mxu1 %v911_v27 }
 0x270   : > { %926 = vmatpush1.bf16.msra.mxu1 %v910_v28  ;;  %v907_v29 = vld [vmem:[#allocation2 + $0x48] sm:$0xf]  ;;  %v906_v30 = vld [vmem:[#allocation2 + $0x40] sm:$0xf] }
 0x271   : > { %v913_v31 = vpack.c.bf16 %v907_v29, %v907_v29  ;;  %v912_v32 = vpack.c.bf16 %v906_v30, %v906_v30 }
 0x273   : > { %1115 = vmatprep.subr.msk.bf16.mxu1 %vm629_vm8, %v913_v31  ;;  %v918_v7 = vsel %vm629_vm8, %v912_v32, 0 }
 0x274   : > { %928 = vmatpush1.bf16.msra.mxu1 %v918_v7 }
 0x275   : > { %v968_v35 = vpop.permute.xlu1 %967 }
 0x276   : > { %v976_v39 = vpop.permute.xlu0 %975 }
 0x277   : > { %1116 = vmatmul.mubr.msk.bf16.vlgmr.msra.gmra.mrb[0].mxu1 %vm625_vm9, %v695_v33 }
 0x34a   : > { %v957_v36 = vpop.f32.mrb[0].mxu1 }
 0x34b   : > { %v970_v37 = vmul.f32 %v968_v35, %v957_v36  ;;  %v959_v38 = vpop.f32.mrb[1].mxu1 }
 0x34c   : > { %v971_v40 = vmul.f32 %v968_v35, %v959_v38  ;;  %v961_v42 = vpop.f32.mrb[2].mxu1 }
 0x34d   : > { %v978_v43 = vadd.f32 %v976_v39, %v970_v37  ;;  %v962_v44 = vpop.f32.mrb[3].mxu1 }
 0x34e   : > { %v979_v45 = vadd.f32 %v976_v39, %v971_v40 }
 0x34f   : > { %v984_v46 = vadd.f32 %v980_v34, %v978_v43 }
 0x350   : > { %v985_v47 = vadd.f32 %v982_v41, %v979_v45 }
 0x351   : > { %v986_v48 = vmax.f32 %v984_v46, 0.0 }
 0x352   : > { %v987_v49 = vmax.f32 %v985_v47, 0.0 }
 0x354   : > { %v990_v50 = vcombine.low %v986_v48, %v987_v49 }
 0x356   : > { %992 = vst [vmem:[%s378_s20] sm:$0xff] %v990_v50 }
 0x357   : > { %1268 = shalt.err (!%p1265_p9)
}
 0x358   : > { %s1269_s25 = scalar_lea.hbm %s1721_s22, 128  ;;  %s1273_s17 = scalar_lea.hbm %s1774_s9, 256 }
 0x359   : > { %p1270_p2 = scmp.ne.s32.totalorder %s1721_s22, %s1269_s25  ;;  %p1274_p11 = scmp.lt.u32.totalorder %s1721_s22, %s1774_s9 }
 0x35a   : > { %p1275_p1 = scmp.lt.u32.totalorder %s1273_s17, %s1269_s25  ;;  %p1277_p6 = scmp.lt.u32.totalorder %s1269_s25, %s1721_s22 }
 0x35b   : > { %p1271_p5 = pnand %p1270_p2, %p1482_p12 }
 0x35c   : > { %p1276_p4 = por %p1275_p1, %p1274_p11 }
 0x35d   : > { %p1272_p0 = pneg %p1271_p5 }
 0x35e   : > { %p1278_p8 = por %p1277_p6, %p1276_p4 }
 0x360   : > { %p1279_p10 = pnand %p1278_p8, %p1272_p0 }
 0x362   : > { %1282 = shalt.err (!%p1279_p10)
}
 0x363   : > { %1131 = dma.vmem_to_hbm [thread:$0]  (%p1482_p12), %s1723_s23, 128, %s1721_s22, %s994_s14  }
 0x364 PF: > { %s1796_s24 = sld [smem:[#allocation12_spill]]  ;;  %s1020_s27 = sand.u32 1, %s1313_s30  }
 0x365   : > { %p1798_p3 = scmp.ge.s32.totalorder %s1325_s12, 2  ;;  %s1021_s15 = scalar_lea.sflag [#allocation5], %s1020_s27 }
 0x36a   : > { %p1797_p13 = scmp.ne.s32.totalorder %s1796_s24, 0 }
 0x36c   : > { %p1142_p7 = pnand %p1798_p3, %p1797_p13 }
 0x36e   : > { %1308 = dma.done.wait (!%p1142_p7), %s1021_s15, 128  }
 0x36f   : > { %1310 = vsyncadd (!%p1142_p7), %s1021_s15, 4294967168  ;;  %s1799_s12 = sld [smem:[#allocation13_spill]]  ;;  %s1800_s30 = smov %s1317_s10 }
 0x370   : > { %s1801_s10 = smov %s1321_s11  ;;  %s1802_s11 = smov %s1478_s28 }
 0x375   : > { %p23_p9 = scmp.ge.s32.totalorder %s1799_s12, 4  }
 0x377   :  { %25 = sbr.rel (!%p23_p9) target bundleno = 6 (0x6), region = 115 }
 0x37e   :  { %1026 = vsyncpa [#allocation4], 1 }
 0x37f   :  { %1028 = vsyncpa [#allocation4 + $0x1], 1 }
 0x380   :  { %1029 = vsyncpa [#allocation7], 1 }
 0x381   :  { %1030 = vsyncpa [#allocation5], 1 }
 0x382   :  { %1032 = vsyncpa [#allocation5 + $0x1], 1 }

</bundles_post_ra>
